<compile_context>
chip_gen: v6e
topology: v6e:2x2x1
jax: 0.10.0
libtpu: 0.0.40
codegen_flags: <defaults>
</compile_context>

<pallas_src>
import functools

import jax
import jax.numpy as jnp
import numpy as np
from jax.experimental import pallas as pl
from jax.experimental.pallas import tpu as pltpu


def _conv_kernel(x_ref, w_ref, b_ref, o_ref, *, kh_sz, oh_tile, stride):
    """One (batch, OH row-tile) step of the convolution.

    x_ref: (1, HP, WP*Cin)        padded input, W/Cin folded on the lane axis
    w_ref: (KH*WP*Cin, OW*Cout)   bf16 expanded conv weight (see wrapper)
    b_ref: (1, OW*Cout)           f32 bias, pre-broadcast over OW (lane-dense)
    o_ref: (1, OH_TILE, OW*Cout)  lane-dense output tile
    """
    row0 = pl.multiple_of(pl.program_id(1) * (oh_tile * stride),
                          oh_tile * stride)
    # KH row-slabs, each (OH_TILE, WP*Cin): dynamic start on the sublane axis
    # only; the lane axis is a full contiguous load (no per-tap lane slices).
    if stride == 1:
        slabs = [x_ref[0, pl.ds(row0 + k, oh_tile), :] for k in range(kh_sz)]
    else:
        # TODO(synk): stride > 1 uses a strided sublane slice; only the
        # stride == 1 path is exercised (and thus verified) in this script.
        slabs = [x_ref[0, pl.ds(row0 + k, oh_tile, stride), :]
                 for k in range(kh_sz)]
    patches = jnp.concatenate(slabs, axis=-1).astype(jnp.bfloat16)
    # Single MXU matmul, f32 accumulation: (OH_TILE, KH*WP*Cin) @ (.., OW*Cout)
    acc = jnp.dot(patches, w_ref[...], preferred_element_type=jnp.float32)
    o_ref[0] = (acc + b_ref[...]).astype(o_ref.dtype)


@functools.partial(jax.jit, static_argnames=("stride", "padding"))
def auto_conv2d(x_nchw, weight_oihw, bias, *, stride=1, padding=0):
    """x_nchw: (N, Cin, H, W); weight_oihw: (Cout, Cin, KH, KW); bias: (Cout,)."""
    n, cin, h_in, w_in = x_nchw.shape
    cout, _, kh_sz, kw_sz = weight_oihw.shape
    oh = (h_in + 2 * padding - kh_sz) // stride + 1
    ow = (w_in + 2 * padding - kw_sz) // stride + 1

    # ---- wrapper-side layout glue (tiny next to the conv; fused under jit).
    # TODO(synk): for large images fold the pad into the kernel (zeroed VMEM
    # scratch) to save one HBM round trip; at these shapes it is noise.
    x_nhwc = jnp.transpose(x_nchw, (0, 2, 3, 1))
    x_pad = jnp.pad(x_nhwc, ((0, 0), (padding, padding),
                             (padding, padding), (0, 0)))
    hp, wp = x_pad.shape[1], x_pad.shape[2]
    x_flat = x_pad.reshape(n, hp, wp * cin)            # lanes = W*Cin

    # ---- expanded weight: fold the KW/Cin contraction and the output-column
    # (OW) selection into one (KH*WP*Cin, OW*Cout) matrix so the kernel needs
    # exactly one matmul and zero gathers/reshapes.
    #   w_all[kh, iw*Cin + c, ow*Cout + co] = weight[co, c, kh, iw - ow*stride]
    #   (zero when iw - ow*stride is outside [0, KW)).
    # Sized for small convs: memory scales with WP*OW (here 216x128 bf16).
    w_kkio = jnp.transpose(weight_oihw, (2, 3, 1, 0))   # (KH, KW, Cin, Cout)
    iw = jnp.arange(wp)
    sel = (iw[None, :, None] ==
           (jnp.arange(ow)[None, None, :] * stride +
            jnp.arange(kw_sz)[:, None, None])).astype(jnp.float32)  # (KW,WP,OW)
    w_all = jnp.einsum("kpo,hkcd->hpcod", sel, w_kkio)  # (KH, WP, Cin, OW, Cout)
    w_all = w_all.reshape(kh_sz * wp * cin, ow * cout).astype(jnp.bfloat16)

    # bias pre-broadcast over OW so the in-kernel add is lane-dense.
    b_dense = jnp.tile(bias.astype(jnp.float32), ow).reshape(1, ow * cout)

    # ---- OH row tiling: multiple-of-8 sublane tiles (or the whole OH).
    oh_tile = 8 if (oh % 8 == 0) else oh
    n_tiles = oh // oh_tile

    kernel = functools.partial(_conv_kernel, kh_sz=kh_sz, oh_tile=oh_tile,
                               stride=stride)

    out_dense = pl.pallas_call(
        kernel,
        out_shape=jax.ShapeDtypeStruct((n, oh, ow * cout), x_nchw.dtype),
        grid_spec=pltpu.PrefetchScalarGridSpec(
            num_scalar_prefetch=0,
            grid=(n, n_tiles),
            in_specs=[
                # Full padded image per batch element; block index ignores the
                # row-tile axis so it is not re-DMA'd per tile.
                pl.BlockSpec((1, hp, wp * cin), lambda b, t: (b, 0, 0)),
                pl.BlockSpec((kh_sz * wp * cin, ow * cout),
                             lambda b, t: (0, 0)),
                pl.BlockSpec((1, ow * cout), lambda b, t: (0, 0)),
            ],
            out_specs=pl.BlockSpec((1, oh_tile, ow * cout),
                                   lambda b, t: (b, t, 0)),
        ),
        compiler_params=pltpu.CompilerParams(
            dimension_semantics=("parallel", "parallel")),
    )(x_flat, w_all, b_dense)

    # (N, OH, OW*Cout) -> NCHW (PyTorch convention).
    return jnp.transpose(out_dense.reshape(n, oh, ow, cout), (0, 3, 1, 2))


def init_conv_params(key, in_channels, out_channels, kernel_size):
    """Deterministic init mimicking PyTorch Conv2d defaults (uniform +-1/sqrt(fan_in))."""
    kw_key, kb_key = jax.random.split(key)
    fan_in = in_channels * kernel_size * kernel_size
    bound = 1.0 / np.sqrt(fan_in)
    weight = jax.random.uniform(
        kw_key, (out_channels, in_channels, kernel_size, kernel_size),
        minval=-bound, maxval=bound, dtype=jnp.float32)
    bias = jax.random.uniform(
        kb_key, (out_channels,), minval=-bound, maxval=bound,
        dtype=jnp.float32)
    return weight, bias


if __name__ == "__main__":
    # AutoConv2d(out_channels=8, kernel_size=3, stride=1, padding=1)
    out_channels, kernel_size, stride, padding = 8, 3, 1, 1

    key = jax.random.PRNGKey(0)
    kx, kp = jax.random.split(key)
    x = jax.random.normal(kx, (2, 4, 16, 16), dtype=jnp.float32)   # NCHW

    in_channels = x.shape[1]          # inferred lazily, like the PyTorch module
    weight, bias = init_conv_params(kp, in_channels, out_channels, kernel_size)

    y = auto_conv2d(x, weight, bias, stride=stride, padding=padding)
    y = jax.block_until_ready(y)

    # Reference: XLA conv on the same bf16-rounded operands (the kernel feeds
    # the MXU bf16 inputs and accumulates in f32).
    x_bf = x.astype(jnp.bfloat16).astype(jnp.float32)
    w_bf = weight.astype(jnp.bfloat16).astype(jnp.float32)
    y_ref = jax.lax.conv_general_dilated(
        x_bf, w_bf, window_strides=(stride, stride),
        padding=[(padding, padding), (padding, padding)],
        dimension_numbers=("NCHW", "OIHW", "NCHW"),
        precision=jax.lax.Precision.HIGHEST)
    y_ref = y_ref + bias.reshape(1, -1, 1, 1)

    assert y.shape == y_ref.shape == (2, out_channels, 16, 16)
    np.testing.assert_allclose(np.asarray(y), np.asarray(y_ref),
                               rtol=2e-2, atol=2e-2)

    print("KERNEL_OK")
</pallas_src>

<mosaic_0001>
module attributes {stable_mosaic.version = 11 : i64} {
  func.func @_conv_kernel(%arg0: i32, %arg1: i32, %arg2: memref<1x18x72xf32, #tpu.memory_space<vmem>>, %arg3: memref<216x128xbf16, #tpu.memory_space<vmem>>, %arg4: memref<1x128xf32, #tpu.memory_space<vmem>>, %arg5: memref<1x8x128xf32, #tpu.memory_space<vmem>>) attributes {dimension_semantics = [#tpu.dimension_semantics<parallel>, #tpu.dimension_semantics<parallel>], iteration_bounds = array<i64: 2, 2>, scalar_prefetch = 0 : i64, scratch_operands = 0 : i64, tpu.core_type = #tpu.core_type<tc>, window_params = [{transform_indices = @transform_0, window_bounds = array<i64: 1, 18, 72>}, {pipeline_mode = #tpu.pipeline_mode<synchronous>, transform_indices = @transform_1, window_bounds = array<i64: 216, 128>}, {pipeline_mode = #tpu.pipeline_mode<synchronous>, transform_indices = @transform_2, window_bounds = array<i64: 1, 128>}, {transform_indices = @transform_3, window_bounds = array<i64: 1, 8, 128>}]} {
    %c8_i32 = arith.constant 8 : i32
    %0 = arith.muli %arg1, %c8_i32 : i32
    %1 = tpu.assume_multiple %0, 8 : i32
    %c0_i32 = arith.constant 0 : i32
    %2 = arith.addi %1, %c0_i32 : i32
    %c0 = arith.constant 0 : index
    %3 = arith.index_cast %2 : i32 to index
    %c0_0 = arith.constant 0 : index
    %4 = vector.load %arg2[%c0, %3, %c0_0] : memref<1x18x72xf32, #tpu.memory_space<vmem>>, vector<1x8x72xf32>
    %5 = vector.shape_cast %4 : vector<1x8x72xf32> to vector<8x72xf32>
    %c1_i32 = arith.constant 1 : i32
    %6 = arith.addi %1, %c1_i32 : i32
    %c0_1 = arith.constant 0 : index
    %7 = arith.index_cast %6 : i32 to index
    %c0_2 = arith.constant 0 : index
    %8 = vector.load %arg2[%c0_1, %7, %c0_2] : memref<1x18x72xf32, #tpu.memory_space<vmem>>, vector<1x8x72xf32>
    %9 = vector.shape_cast %8 : vector<1x8x72xf32> to vector<8x72xf32>
    %c2_i32 = arith.constant 2 : i32
    %10 = arith.addi %1, %c2_i32 : i32
    %c0_3 = arith.constant 0 : index
    %11 = arith.index_cast %10 : i32 to index
    %c0_4 = arith.constant 0 : index
    %12 = vector.load %arg2[%c0_3, %11, %c0_4] : memref<1x18x72xf32, #tpu.memory_space<vmem>>, vector<1x8x72xf32>
    %13 = vector.shape_cast %12 : vector<1x8x72xf32> to vector<8x72xf32>
    %14 = tpu.concatenate %5, %9, %13 in 1 : vector<8x72xf32>, vector<8x72xf32>, vector<8x72xf32> -> vector<8x216xf32>
    %15 = arith.truncf %14 : vector<8x216xf32> to vector<8x216xbf16>
    %c0_5 = arith.constant 0 : index
    %c0_6 = arith.constant 0 : index
    %16 = vector.load %arg3[%c0_5, %c0_6] : memref<216x128xbf16, #tpu.memory_space<vmem>>, vector<216x128xbf16>
    %cst = arith.constant dense<0.000000e+00> : vector<8x128xf32>
    %17 = tpu.matmul %15, %16, %cst {dimension_numbers = #tpu.dot_dimension_numbers<[1], [0], [0], [1], [0, 0, 1, 1], [], []>} : vector<8x216xbf16>, vector<216x128xbf16>, vector<8x128xf32> -> vector<8x128xf32>
    %c0_7 = arith.constant 0 : index
    %c0_8 = arith.constant 0 : index
    %18 = vector.load %arg4[%c0_7, %c0_8] : memref<1x128xf32, #tpu.memory_space<vmem>>, vector<1x128xf32>
    %19 = vector.broadcast %18 : vector<1x128xf32> to vector<8x128xf32>
    %20 = arith.addf %17, %19 : vector<8x128xf32>
    %c0_9 = arith.constant 0 : index
    %c0_10 = arith.constant 0 : index
    %c0_11 = arith.constant 0 : index
    %21 = vector.load %arg5[%c0_9, %c0_10, %c0_11] : memref<1x8x128xf32, #tpu.memory_space<vmem>>, vector<1x8x128xf32>
    %22 = vector.shape_cast %21 : vector<1x8x128xf32> to vector<8x128xf32>
    %23 = vector.shape_cast %20 : vector<8x128xf32> to vector<1x8x128xf32>
    tpu.vector_store %arg5[%c0_9, %c0_10, %c0_11], %23 {strides = array<i32>} : memref<1x8x128xf32, #tpu.memory_space<vmem>>, vector<1x8x128xf32>,
    return
  }
  func.func @transform_0(%arg0: i32, %arg1: i32) -> (i32, i32, i32) {
    %c0_i32 = arith.constant 0 : i32
    %c0_i32_0 = arith.constant 0 : i32
    %c0_i32_1 = arith.constant 0 : i32
    return %arg0, %c0_i32, %c0_i32_0 : i32, i32, i32
  }
  func.func @transform_1(%arg0: i32, %arg1: i32) -> (i32, i32) {
    %c0_i32 = arith.constant 0 : i32
    %c0_i32_0 = arith.constant 0 : i32
    %c0_i32_1 = arith.constant 0 : i32
    return %c0_i32, %c0_i32_0 : i32, i32
  }
  func.func @transform_2(%arg0: i32, %arg1: i32) -> (i32, i32) {
    %c0_i32 = arith.constant 0 : i32
    %c0_i32_0 = arith.constant 0 : i32
    %c0_i32_1 = arith.constant 0 : i32
    return %c0_i32, %c0_i32_0 : i32, i32
  }
  func.func @transform_3(%arg0: i32, %arg1: i32) -> (i32, i32, i32) {
    %c0_i32 = arith.constant 0 : i32
    %c0_i32_0 = arith.constant 0 : i32
    return %arg0, %arg1, %c0_i32 : i32, i32, i32
  }
}

</mosaic_0001>

<bundles_post_ra>
// kernel: tile.8
= control target key start
LH: loop header
LB: loop body
LE: loop exit
PB: predicated region body
PF: predicated region fallthrough
CT: control target
= control target key end

     0   :  { %s28_s0 = inlined_call_operand.vmem [shape: f32[8], index: 0, kind: input, shape index: {}]   ;;  %s29_s1 = inlined_call_operand.vmem [shape: f32[16,8], index: 1, kind: output, shape index: {}]  }
   0x1   :  { %v4_v0 = vld [vmem:[%s28_s0] ss:$0 sm:$0xff] }
   0x2   :  { %5 = vst [vmem:[%s29_s1] sm:$0xff] %v4_v0  ;;  %8 = vst [vmem:[%s29_s1 + $0x8] sm:$0xff] %v4_v0 }

// kernel: tile.9
= control target key start
LH: loop header
LB: loop body
LE: loop exit
PB: predicated region body
PF: predicated region fallthrough
CT: control target
= control target key end

     0   :  { %s133_s10 = smov 120   ;;  %s134_s11 = smov 104   ;;  %vm3_vm0 = vcmask 64512   ;;  %vm9_vm1 = vcmask 1048512   ;;  %vm15_vm2 = vcmask 982912   ;;  %vm21_vm3 = vcmask 917312   ;;  %s209_s0 = inlined_call_operand.vmem [shape: f32[16,8], index: 0, kind: input, shape index: {}]   ;;  %s210_s1 = inlined_call_operand.vmem [shape: f32[1,128], index: 1, kind: output, shape index: {}]  }
   0x1   :  { %v103_v0 = vld [vmem:[%s209_s0 + $0xf] sm:$0x1]   ;;  %v105_v1 = vld [vmem:[%s209_s0 + $0xd] sm:$0x1]   ;;  %v104_v2 = vld [vmem:[%s209_s0 + $0xe] sm:$0x1]  }
   0x2   :  { %7 = vrot.lane.b32.xlu0 %v103_v0, %s133_s10  ;;  %19 = vrot.lane.b32.xlu1 %v105_v1, %s134_s11  ;;  %v106_v3 = vld [vmem:[%s209_s0 + $0xc] sm:$0x1]   ;;  %s135_s16 = smov 112   ;;  %s136_s17 = smov 96   ;;  %v107_v4 = vld [vmem:[%s209_s0 + $0xb] sm:$0x1]  }
   0x3   :  { %v108_v5 = vld [vmem:[%s209_s0 + $0xa] sm:$0x1]   ;;  %v2_v6 = vld [vmem:[%s209_s0] sm:$0x1]   ;;  %s137_s24 = smov 88   ;;  %s138_s25 = smov 80  }
   0x4   :  { %4 = vst.msk [vmem:[#allocation0] sm:$0x1] %vm3_vm0, %v2_v6   ;;  %v109_v7 = vld [vmem:[%s209_s0 + $0x9] sm:$0x1]   ;;  %v110_v8 = vld [vmem:[%s209_s0 + $0x8] sm:$0x1]  }
   0x5   :  { %s139_s30 = smov 72   ;;  %s140_s2 = smov 64   ;;  %v111_v9 = vld [vmem:[%s209_s0 + $0x7] sm:$0x1]   ;;  %v112_v10 = vld [vmem:[%s209_s0 + $0x6] sm:$0x1]  }
   0x6   :  { %13 = vrot.lane.b32.xlu0 %v104_v2, %s135_s16  ;;  %25 = vrot.lane.b32.xlu1 %v106_v3, %s136_s17  ;;  %s141_s7 = smov 56   ;;  %s142_s8 = smov 48   ;;  %v113_v11 = vld [vmem:[%s209_s0 + $0x5] sm:$0x1]   ;;  %v114_v12 = vld [vmem:[%s209_s0 + $0x4] sm:$0x1]  }
   0x7   :  { %s143_s13 = smov 40   ;;  %s144_s14 = smov 32   ;;  %v115_v13 = vld [vmem:[%s209_s0 + $0x3] sm:$0x1]   ;;  %v116_v14 = vld [vmem:[%s209_s0 + $0x2] sm:$0x1]  }
   0x8   :  { %s145_s19 = smov 24   ;;  %s146_s20 = smov 16   ;;  %v117_v15 = vld [vmem:[%s209_s0 + $0x1] sm:$0x1]   ;;  %vm27_vm4 = vcmask 851712   ;;  %vm33_vm5 = vcmask 786112  }
   0x9   :  { %s147_s0 = smov 8   ;;  %vm39_vm6 = vcmask 720512   ;;  %vm45_vm7 = vcmask 654912   ;;  %vm51_vm8 = vcmask 589312   ;;  %vm57_vm9 = vcmask 523712  }
   0xa   :  { %31 = vrot.lane.b32.xlu0 %v107_v4, %s137_s24  ;;  %37 = vrot.lane.b32.xlu1 %v108_v5, %s138_s25  ;;  %vm63_vm10 = vcmask 458112   ;;  %vm69_vm11 = vcmask 392512   ;;  %vm75_vm12 = vcmask 326912   ;;  %vm81_vm13 = vcmask 261312  }
   0xb   :  { %vm87_vm14 = vcmask 195712   ;;  %vm93_vm15 = vcmask 130112  }
   0xe   :  { %43 = vrot.lane.b32.xlu0 %v109_v7, %s139_s30  ;;  %49 = vrot.lane.b32.xlu1 %v110_v8, %s140_s2 }
  0x12   :  { %55 = vrot.lane.b32.xlu0 %v111_v9, %s141_s7  ;;  %61 = vrot.lane.b32.xlu1 %v112_v10, %s142_s8 }
  0x16   :  { %67 = vrot.lane.b32.xlu0 %v113_v11, %s143_s13  ;;  %73 = vrot.lane.b32.xlu1 %v114_v12, %s144_s14 }
  0x1a   :  { %79 = vrot.lane.b32.xlu0 %v115_v13, %s145_s19  ;;  %85 = vrot.lane.b32.xlu1 %v116_v14, %s146_s20 }
  0x1e   :  { %91 = vrot.lane.b32.xlu0 %v117_v15, %s147_s0 }
  0x74   :  { %v8_v16 = vpop.permute.xlu0 %7   ;;  %v20_v17 = vpop.permute.xlu1 %19  }
  0x75   :  { %10 = vst.msk [vmem:[#allocation0] sm:$0x1] %vm9_vm1, %v8_v16  }
  0x78   :  { %v14_v18 = vpop.permute.xlu0 %13   ;;  %v26_v19 = vpop.permute.xlu1 %25  }
  0x79   :  { %16 = vst.msk [vmem:[#allocation0] sm:$0x1] %vm15_vm2, %v14_v18  }
  0x7a   :  { %22 = vst.msk [vmem:[#allocation0] sm:$0x1] %vm21_vm3, %v20_v17  }
  0x7b   :  { %28 = vst.msk [vmem:[#allocation0] sm:$0x1] %vm27_vm4, %v26_v19  }
  0x7c   :  { %v32_v20 = vpop.permute.xlu0 %31   ;;  %v38_v21 = vpop.permute.xlu1 %37  }
  0x7d   :  { %34 = vst.msk [vmem:[#allocation0] sm:$0x1] %vm33_vm5, %v32_v20  }
  0x7e   :  { %40 = vst.msk [vmem:[#allocation0] sm:$0x1] %vm39_vm6, %v38_v21  }
  0x80   :  { %v44_v22 = vpop.permute.xlu0 %43   ;;  %v50_v23 = vpop.permute.xlu1 %49  }
  0x81   :  { %46 = vst.msk [vmem:[#allocation0] sm:$0x1] %vm45_vm7, %v44_v22  }
  0x82   :  { %52 = vst.msk [vmem:[#allocation0] sm:$0x1] %vm51_vm8, %v50_v23  }
  0x84   :  { %v56_v24 = vpop.permute.xlu0 %55   ;;  %v62_v25 = vpop.permute.xlu1 %61  }
  0x85   :  { %58 = vst.msk [vmem:[#allocation0] sm:$0x1] %vm57_vm9, %v56_v24  }
  0x86   :  { %64 = vst.msk [vmem:[#allocation0] sm:$0x1] %vm63_vm10, %v62_v25  }
  0x88   :  { %v68_v26 = vpop.permute.xlu0 %67   ;;  %v74_v27 = vpop.permute.xlu1 %73  }
  0x89   :  { %70 = vst.msk [vmem:[#allocation0] sm:$0x1] %vm69_vm11, %v68_v26  }
  0x8a   :  { %76 = vst.msk [vmem:[#allocation0] sm:$0x1] %vm75_vm12, %v74_v27  }
  0x8c   :  { %v80_v28 = vpop.permute.xlu0 %79   ;;  %v86_v29 = vpop.permute.xlu1 %85  }
  0x8d   :  { %82 = vst.msk [vmem:[#allocation0] sm:$0x1] %vm81_vm13, %v80_v28  }
  0x8e   :  { %88 = vst.msk [vmem:[#allocation0] sm:$0x1] %vm87_vm14, %v86_v29  }
  0x90   :  { %v92_v30 = vpop.permute.xlu0 %91  }
  0x91   :  { %94 = vst.msk [vmem:[#allocation0] sm:$0x1] %vm93_vm15, %v92_v30  }
  0x98   :  { %v99_v31 = vld [vmem:[#allocation0] sm:$0x1] }
  0x99   :  { %102 = vst [vmem:[%s210_s1] sm:$0x1] %v99_v31 }

// kernel: auto_conv2d.1
= control target key start
LH: loop header
LB: loop body
LE: loop exit
PB: predicated region body
PF: predicated region fallthrough
CT: control target
= control target key end

     0   :  { %s619_s12 = smov 0   ;;  %s621_s13 = smov 0   ;;  %s729_s0 = inlined_call_operand.vmem [shape: f32[2,18,72], index: 0, kind: input, shape index: {}]   ;;  %s730_s1 = inlined_call_operand.vmem [shape: bf16[216,128], index: 1, kind: input, shape index: {}]   ;;  %s731_s2 = inlined_call_operand.vmem [shape: f32[1,128], index: 2, kind: input, shape index: {}]   ;;  %s732_s3 = inlined_call_operand.vmem [shape: f32[2,16,128], index: 3, kind: output, shape index: {}]  }
   0x1   :  { %s623_s14 = smov 0   ;;  %s625_s15 = smov 0  }
   0x2   :  { %s627_s16 = smov 0  }
   0x3 LB: > { %s22_s17 = sadd.s32 1, %s586_s14  ;;  %s25_s18 = sadd.s32 1, %s590_s15  ;;  %s594_s16 = sphi %s627_s16, %s13_s16   ;;  %s590_s15 = sphi %s625_s15, %s736_s15   ;;  %s586_s14 = sphi %s623_s14, %s735_s14   ;;  %s582_s13 = sphi %s621_s13, %s734_s13   ;;  %s578_s12 = sphi %s619_s12, %s733_s12  }
   0x4   : > { %p23_p0 = scmp.ge.s32.totalorder %s22_s17, 2  ;;  %p471_p1 = scmp.ge.s32.totalorder %s594_s16, 1 }
   0x5   : > { %p151_p2 = scmp.lt.s32.totalorder %s594_s16, 5 }
   0x6   : > { %s738_s17 = smov (%p23_p0, %s22_s17), 0  ;;  %s740_s18 = smov (!%p23_p0, %s25_s18), %s590_s15 }
   0x7   : > { %p152_p3 = pnand %p471_p1, %p151_p2  ;;  %p27_p4 = scmp.ge.s32.totalorder %s740_s18, 2 }
   0x8   : > { %p178_p5 = scmp.lt.s32.totalorder (!%p152_p3), %s582_s13, 1  ;;  %s475_s24 = sshll.u32 (!%p152_p3), %s578_s12, 3 }
   0x9   : > { %s742_s18 = smov (%p27_p4, %s740_s18), 0  ;;  %155 = sbr.rel (%p152_p3) target bundleno = 342 (0x156), region = 32 }
   0xa   : > { %s597_s4 = smov (!%p152_p3), 72   ;;  %s598_s7 = smov (!%p152_p3), 16  }
   0xb   : > { %p185_p6 = scmp.lt.s32.totalorder (!%p152_p3), %s578_s12, 1 }
   0xe   : > { %v542_v0 = vld [vmem:[%s730_s1 + $0x38] sm:$0xff]   ;;  %v596_v1 = vmov 0   ;;  %s744_s13 = smov (!%p178_p5, %s582_s13), 1  ;;  %v543_v2 = vld [vmem:[%s730_s1 + $0x30] sm:$0xff]   ;;  %v544_v3 = vld [vmem:[%s730_s1 + $0x28] sm:$0xff]   ;;  %vm334_vm0 = vcmask 1043456  }
   0xf   : > { %338 = vmatprep.subr.bf16.mxu0 %v596_v1  ;;  %s498_s23 = smul.u32 24, %s744_s13  ;;  %v545_v5 = vld [vmem:[%s730_s1 + $0x20] sm:$0xff]   ;;  %v546_v7 = vld [vmem:[%s730_s1 + $0x18] sm:$0xff]   ;;  %v547_v8 = vld [vmem:[%s730_s1 + $0x10] sm:$0xff]   ;;  %vm209_vm1 = vcmask 588800   ;;  %vm211_vm2 = vcmask 130048  }
  0x10   : > { %339 = vmatpush1.bf16.msra.mxu0 %v542_v0  ;;  %v548_v9 = vld [vmem:[%s730_s1 + $0x8] sm:$0xff]   ;;  %v549_v10 = vld [vmem:[%s730_s1] sm:$0xff]   ;;  %v552_v14 = vld [vmem:[%s730_s1 + $0x58] sm:$0xff]   ;;  %vm330_vm3 = vcmask 719872   ;;  %s746_s12 = smov (!%p185_p6, %s578_s12), 1  ;;  %s473_s9 = sshll.u32 %s744_s13, 1 }
  0x11   : > { %340 = vmatprep.subr.bf16.mxu0 %v596_v1  ;;  %s182_s27 = scalar_lea.vmem %s729_s0, %s498_s23  ;;  %v550_v11 = vld [vmem:[%s730_s1 + $0x68] ss:$0 sps:$4 sm:$0xff]   ;;  %v551_v13 = vld [vmem:[%s730_s1 + $0x60] sm:$0xff]   ;;  %v553_v15 = vld [vmem:[%s730_s1 + $0x50] sm:$0xff]   ;;  %s188_s10 = sadd.s32 %s473_s9, %s746_s12 }
  0x12   : > { %s667_s30 = scalar_lea.vmem %s182_s27, %s475_s24  ;;  %v336_v12 = vsel %vm334_vm0, %v550_v11, 0  ;;  %v554_v16 = vld [vmem:[%s730_s1 + $0x48] sm:$0xff]   ;;  %v555_v17 = vld [vmem:[%s730_s1 + $0x40] sm:$0xff]   ;;  %s474_s11 = sshll.u32 %s188_s10, 3 }
  0x13   : > { %v477_v4 = vld [vmem:[%s667_s30 + $0x1] sm:$0xff]  ;;  %v480_v25 = vld [vmem:[%s731_s2] ss:$0 sm:$0xff]  ;;  %s190_s22 = scalar_lea.vmem %s732_s3, %s474_s11 }
  0x14   : > { %341 = vmatpush1.bf16.msra.mxu0 %v543_v2  ;;  %202 = vrot.lane.b32.xlu0 %v477_v4, %s597_s4  ;;  %v479_v6 = vld [vmem:[%s667_s30 + $0x2] sm:$0xff] }
  0x15   : > { %342 = vmatprep.subr.bf16.mxu0 %v596_v1  ;;  %v194_v19 = vld [vmem:[%s667_s30] sm:$0xff] }
  0x18   : > { %343 = vmatpush1.bf16.msra.mxu0 %v544_v3  ;;  %206 = vrot.lane.b32.xlu0 %v479_v6, %s598_s7 }
  0x19   : > { %344 = vmatprep.subr.bf16.mxu0 %v596_v1 }
  0x1c   : > { %345 = vmatpush1.bf16.msra.mxu0 %v545_v5 }
  0x1d   : > { %346 = vmatprep.subr.bf16.mxu0 %v596_v1 }
  0x20   : > { %347 = vmatpush1.bf16.msra.mxu0 %v546_v7 }
  0x21   : > { %348 = vmatprep.subr.bf16.mxu0 %v596_v1 }
  0x24   : > { %349 = vmatpush1.bf16.msra.mxu0 %v547_v8 }
  0x25   : > { %350 = vmatprep.subr.bf16.mxu0 %v596_v1 }
  0x28   : > { %351 = vmatpush1.bf16.msra.mxu0 %v548_v9 }
  0x29   : > { %352 = vmatprep.subr.bf16.mxu0 %v596_v1 }
  0x2c   : > { %353 = vmatpush1.bf16.msra.mxu0 %v549_v10 }
  0x2d   : > { %358 = vmatprep.subr.bf16.mxu0 %v596_v1 }
  0x30   : > { %359 = vmatpush2.bf16.msra.mxu0 %v336_v12 }
  0x31   : > { %360 = vmatprep.subr.bf16.mxu0 %v596_v1 }
  0x34   : > { %361 = vmatpush2.bf16.msra.mxu0 %v551_v13 }
  0x35   : > { %362 = vmatprep.subr.bf16.mxu0 %v596_v1 }
  0x38   : > { %363 = vmatpush2.bf16.msra.mxu0 %v552_v14 }
  0x39   : > { %364 = vmatprep.subr.bf16.mxu0 %v596_v1 }
  0x3c   : > { %365 = vmatpush2.bf16.msra.mxu0 %v553_v15 }
  0x3d   : > { %366 = vmatprep.subr.bf16.mxu0 %v596_v1 }
  0x40   : > { %367 = vmatpush2.bf16.msra.mxu0 %v554_v16 }
  0x41   : > { %368 = vmatprep.subr.bf16.mxu0 %v596_v1 }
  0x44   : > { %369 = vmatpush2.bf16.msra.mxu0 %v555_v17 }
  0x86   : > { %v203_v18 = vpop.permute.xlu0 %202 }
  0x87   : > { %v210_v20 = vsel %vm209_vm1, %v194_v19, %v203_v18 }
  0x88   : > { %v213_v24 = vpack.c.bf16 %v210_v20, %v210_v20 }
  0x8a   : > { %v207_v21 = vpop.permute.xlu0 %206 }
  0x8b   : > { %v212_v22 = vsel %vm211_vm2, %v203_v18, %v207_v21 }
  0x8c   : > { %v214_v23 = vpack.c.bf16 %v212_v22, %v212_v22 }
  0x8e   : > { %495 = vmatprep.mubr.msk.bf16.mxu0 %vm330_vm3, %v214_v23 }
  0x8f   : > { %371 = vmatmul.mubr.bf16.vlgmr.msra.gmra.mxu0 %v213_v24 }
 0x14f   : > { %v372_v26 = vpop.f32.mrf.mxu0 }
 0x150   : > { %v373_v27 = vadd.f32 %v480_v25, %v372_v26 }
 0x151   : > { %v374_v28 = vpop.f32.mrf.mxu0 }
 0x152   : > { %378 = vst [vmem:[%s190_s22] sm:$0xff] %v373_v27 }
 0x153   : > { %v375_v29 = vpop.f32.mrf.mxu0 }
 0x155   : > { %v376_v30 = vpop.f32.mrf.mxu0 }
 0x156 PF: > { %s13_s16 = sadd.s32 1, %s594_s16   ;;  %s733_s12 = smov %s586_s14 }
 0x157   : > { %p10_p7 = scmp.ge.s32.totalorder %s13_s16, 6   ;;  %s734_s13 = smov %s590_s15 }
 0x158   : > { %s735_s14 = smov %s738_s17  ;;  %s736_s15 = smov %s742_s18 }
 0x159   :  { %12 = sbr.rel (!%p10_p7) target bundleno = 3 (0x3), region = 65 }

</bundles_post_ra>
